<compile_context>
chip_gen: v7x
topology: tpu7x:2x2x1
jax: 0.10.0
libtpu: 0.0.40
codegen_flags: <defaults>
</compile_context>

<pallas_src>
import jax
import jax.numpy as jnp
from jax.experimental import pallas as pl
from jax.experimental.pallas import tpu as pltpu

NUM_CLASSES = 10
IN_FEATURES = 28 * 28
HIDDEN = 16
OUT_PAD = 128        # lane-dense padded output width
MAX_TB = 1024        # max batch-tile rows (multiple of 8); sized for v5e scoped VMEM
MIN_STEPS = 4        # guarantee pipelining + v7x megacore sharding when B allows


def _round_up(x, m):
    return ((x + m - 1) // m) * m


def _choose_tb(batch):
    """Adaptive tile: >= MIN_STEPS grid steps when possible, capped at MAX_TB rows."""
    n_steps = max(MIN_STEPS, pl.cdiv(batch, MAX_TB))
    tb = max(8, _round_up(pl.cdiv(batch, n_steps), 8))
    return min(tb, MAX_TB)


def _mlp_kernel(x_ref, w1_ref, b1_ref, w2_ref, b2_ref, w3_ref, b3_ref, o_ref):
    # One batch tile of the whole MLP: three small MXU matmuls + VPU bias/ReLU.
    # Purely row-wise, so undefined rows in a partial last block are safe (their
    # output rows are never written back).
    h1 = jnp.dot(x_ref[...], w1_ref[...], preferred_element_type=jnp.float32)   # (TB, 16)
    h1 = jnp.maximum(h1 + b1_ref[...], 0.0)
    h2 = jnp.dot(h1.astype(w2_ref.dtype), w2_ref[...],
                 preferred_element_type=jnp.float32)                            # (TB, 16)
    h2 = jnp.maximum(h2 + b2_ref[...], 0.0)
    out = jnp.dot(h2.astype(w3_ref.dtype), w3_ref[...],
                  preferred_element_type=jnp.float32)                           # (TB, 128)
    o_ref[...] = (out + b3_ref[...]).astype(o_ref.dtype)


def prepare_params(params, use_bf16=False):
    """One-time prep: transpose PyTorch (out,in) weights to (in,out), reshape biases,
    pad the last layer to a lane-dense 128-wide output, optionally cast weights to bf16."""
    wdt = jnp.bfloat16 if use_bf16 else jnp.float32
    w1 = jnp.asarray(params["w1"], jnp.float32).T                 # (784, 16)
    w2 = jnp.asarray(params["w2"], jnp.float32).T                 # (16, 16)
    w3 = jnp.asarray(params["w3"], jnp.float32).T                 # (16, 10)
    b1 = jnp.asarray(params["b1"], jnp.float32).reshape(1, HIDDEN)
    b2 = jnp.asarray(params["b2"], jnp.float32).reshape(1, HIDDEN)
    b3 = jnp.asarray(params["b3"], jnp.float32).reshape(1, NUM_CLASSES)

    w3p = jnp.zeros((HIDDEN, OUT_PAD), jnp.float32).at[:, :NUM_CLASSES].set(w3)
    b3p = jnp.zeros((1, OUT_PAD), jnp.float32).at[:, :NUM_CLASSES].set(b3)
    return {"w1": w1.astype(wdt), "b1": b1,
            "w2": w2.astype(wdt), "b2": b2,
            "w3p": w3p.astype(wdt), "b3p": b3p,
            "use_bf16": use_bf16}


def nnetwork_forward(x_nchw, prepped):
    """x_nchw: (B, 1, 28, 28). prepped: output of prepare_params()."""
    B = x_nchw.shape[0]
    use_bf16 = prepped["use_bf16"]
    xdt = jnp.bfloat16 if use_bf16 else jnp.float32
    x2d = x_nchw.reshape(B, -1).astype(xdt)     # == torch.flatten(start_dim=1); no pad copy

    tb = _choose_tb(B)
    num_tiles = pl.cdiv(B, tb)                  # partial last block handled by Pallas

    resident = lambda shape: pl.BlockSpec(shape, lambda i: (0, 0))  # stays VMEM-resident

    itemsize = 2 if use_bf16 else 4
    cost = pl.CostEstimate(
        flops=2 * B * (IN_FEATURES * HIDDEN + HIDDEN * HIDDEN + HIDDEN * NUM_CLASSES),
        transcendentals=0,
        bytes_accessed=(B * IN_FEATURES * itemsize            # stream x
                        + B * OUT_PAD * 4                     # lane-dense output
                        + (IN_FEATURES * HIDDEN + HIDDEN * HIDDEN + HIDDEN * OUT_PAD)
                        * itemsize),                          # resident weights (once)
    )

    out_padded = pl.pallas_call(
        _mlp_kernel,
        out_shape=jax.ShapeDtypeStruct((B, OUT_PAD), jnp.float32),
        grid=(num_tiles,),
        in_specs=[
            pl.BlockSpec((tb, IN_FEATURES), lambda i: (i, 0)),   # x: streamed per tile
            resident(prepped["w1"].shape), resident(prepped["b1"].shape),
            resident(prepped["w2"].shape), resident(prepped["b2"].shape),
            resident(prepped["w3p"].shape), resident(prepped["b3p"].shape),
        ],
        out_specs=pl.BlockSpec((tb, OUT_PAD), lambda i: (i, 0)),
        compiler_params=pltpu.CompilerParams(
            dimension_semantics=("parallel",),
        ),
        cost_estimate=cost,
    )(x2d, prepped["w1"], prepped["b1"], prepped["w2"], prepped["b2"],
      prepped["w3p"], prepped["b3p"])

    # Rows are exact (no row padding); only trim the padded lanes back to 10 classes.
    return out_padded[:, :NUM_CLASSES]


def init_params(key):
    """Deterministic init matching nn.Linear shapes (PyTorch-style fan_in uniform)."""
    ks = jax.random.split(key, 6)

    def lin(kw, kb, fan_in, fan_out):
        bound = 1.0 / jnp.sqrt(jnp.float32(fan_in))
        w = jax.random.uniform(kw, (fan_out, fan_in), jnp.float32, -bound, bound)
        b = jax.random.uniform(kb, (fan_out,), jnp.float32, -bound, bound)
        return w, b

    w1, b1 = lin(ks[0], ks[1], IN_FEATURES, HIDDEN)
    w2, b2 = lin(ks[2], ks[3], HIDDEN, HIDDEN)
    w3, b3 = lin(ks[4], ks[5], HIDDEN, NUM_CLASSES)
    return {"w1": w1, "b1": b1, "w2": w2, "b2": b2, "w3": w3, "b3": b3}


def _reference(x_nchw, p):
    x = x_nchw.reshape(x_nchw.shape[0], -1)
    h = jnp.maximum(x @ p["w1"].T + p["b1"], 0.0)
    h = jnp.maximum(h @ p["w2"].T + p["b2"], 0.0)
    return h @ p["w3"].T + p["b3"]


if __name__ == "__main__":
    key = jax.random.PRNGKey(0)
    k_x, k_p = jax.random.split(key)

    params = init_params(k_p)

    # --- exact f32 path, tiny batch (single partial block) ---
    B = 2
    x = jax.random.normal(k_x, (B, 1, 28, 28), jnp.float32)  # NCHW, MNIST-like
    prepped_f32 = prepare_params(params, use_bf16=False)
    out = jax.block_until_ready(nnetwork_forward(x, prepped_f32))
    ref = _reference(x, params)
    assert out.shape == (B, NUM_CLASSES)
    assert jnp.allclose(out, ref, atol=1e-4, rtol=1e-4), "f32 mismatch vs reference"

    # --- larger, non-tile-aligned batch: multiple grid steps + partial last block ---
    B2 = 2500
    x_big = jax.random.normal(k_x, (B2, 1, 28, 28), jnp.float32)
    out_big = jax.block_until_ready(nnetwork_forward(x_big, prepped_f32))
    ref_big = _reference(x_big, params)
    assert out_big.shape == (B2, NUM_CLASSES)
    assert jnp.allclose(out_big, ref_big, atol=1e-3, rtol=1e-3), "f32 mismatch (tiled)"

    # --- bf16 streaming path (halves the HBM-bound x read); looser tolerance ---
    prepped_bf16 = prepare_params(params, use_bf16=True)
    out_bf16 = jax.block_until_ready(nnetwork_forward(x_big, prepped_bf16))
    assert out_bf16.shape == (B2, NUM_CLASSES)
    assert jnp.allclose(out_bf16, ref_big, atol=5e-2, rtol=5e-2), "bf16 mismatch (tiled)"

    print("KERNEL_OK")
</pallas_src>

<mosaic_0001>
module attributes {stable_mosaic.version = 11 : i64} {
  func.func @_mlp_kernel(%arg0: i32, %arg1: memref<8x784xf32, #tpu.memory_space<vmem>>, %arg2: memref<784x16xf32, #tpu.memory_space<vmem>>, %arg3: memref<1x16xf32, #tpu.memory_space<vmem>>, %arg4: memref<16x16xf32, #tpu.memory_space<vmem>>, %arg5: memref<1x16xf32, #tpu.memory_space<vmem>>, %arg6: memref<16x128xf32, #tpu.memory_space<vmem>>, %arg7: memref<1x128xf32, #tpu.memory_space<vmem>>, %arg8: memref<8x128xf32, #tpu.memory_space<vmem>>) attributes {dimension_semantics = [#tpu.dimension_semantics<parallel>], iteration_bounds = array<i64: 1>, scalar_prefetch = 0 : i64, scratch_operands = 0 : i64, tpu.core_type = #tpu.core_type<tc>, window_params = [{transform_indices = @transform_0, window_bounds = array<i64: 8, 784>}, {pipeline_mode = #tpu.pipeline_mode<synchronous>, transform_indices = @transform_1, window_bounds = array<i64: 784, 16>}, {pipeline_mode = #tpu.pipeline_mode<synchronous>, transform_indices = @transform_2, window_bounds = array<i64: 1, 16>}, {pipeline_mode = #tpu.pipeline_mode<synchronous>, transform_indices = @transform_3, window_bounds = array<i64: 16, 16>}, {pipeline_mode = #tpu.pipeline_mode<synchronous>, transform_indices = @transform_4, window_bounds = array<i64: 1, 16>}, {pipeline_mode = #tpu.pipeline_mode<synchronous>, transform_indices = @transform_5, window_bounds = array<i64: 16, 128>}, {pipeline_mode = #tpu.pipeline_mode<synchronous>, transform_indices = @transform_6, window_bounds = array<i64: 1, 128>}, {transform_indices = @transform_7, window_bounds = array<i64: 8, 128>}]} {
    %c0 = arith.constant 0 : index
    %c0_0 = arith.constant 0 : index
    %0 = vector.load %arg1[%c0, %c0_0] : memref<8x784xf32, #tpu.memory_space<vmem>>, vector<8x784xf32>
    %c0_1 = arith.constant 0 : index
    %c0_2 = arith.constant 0 : index
    %1 = vector.load %arg2[%c0_1, %c0_2] : memref<784x16xf32, #tpu.memory_space<vmem>>, vector<784x16xf32>
    %cst = arith.constant dense<0.000000e+00> : vector<8x16xf32>
    %2 = tpu.matmul %0, %1, %cst {dimension_numbers = #tpu.dot_dimension_numbers<[1], [0], [0], [1], [0, 0, 1, 1], [], []>} : vector<8x784xf32>, vector<784x16xf32>, vector<8x16xf32> -> vector<8x16xf32>
    %c0_3 = arith.constant 0 : index
    %c0_4 = arith.constant 0 : index
    %3 = vector.load %arg3[%c0_3, %c0_4] : memref<1x16xf32, #tpu.memory_space<vmem>>, vector<1x16xf32>
    %4 = vector.broadcast %3 : vector<1x16xf32> to vector<8x16xf32>
    %5 = arith.addf %2, %4 : vector<8x16xf32>
    %cst_5 = arith.constant 0.000000e+00 : f32
    %6 = vector.broadcast %cst_5 : f32 to vector<8x16xf32>
    %7 = arith.maximumf %5, %6 : vector<8x16xf32>
    %c0_6 = arith.constant 0 : index
    %c0_7 = arith.constant 0 : index
    %8 = vector.load %arg4[%c0_6, %c0_7] : memref<16x16xf32, #tpu.memory_space<vmem>>, vector<16x16xf32>
    %cst_8 = arith.constant dense<0.000000e+00> : vector<8x16xf32>
    %9 = tpu.matmul %7, %8, %cst_8 {dimension_numbers = #tpu.dot_dimension_numbers<[1], [0], [0], [1], [0, 0, 1, 1], [], []>} : vector<8x16xf32>, vector<16x16xf32>, vector<8x16xf32> -> vector<8x16xf32>
    %c0_9 = arith.constant 0 : index
    %c0_10 = arith.constant 0 : index
    %10 = vector.load %arg5[%c0_9, %c0_10] : memref<1x16xf32, #tpu.memory_space<vmem>>, vector<1x16xf32>
    %11 = vector.broadcast %10 : vector<1x16xf32> to vector<8x16xf32>
    %12 = arith.addf %9, %11 : vector<8x16xf32>
    %cst_11 = arith.constant 0.000000e+00 : f32
    %13 = vector.broadcast %cst_11 : f32 to vector<8x16xf32>
    %14 = arith.maximumf %12, %13 : vector<8x16xf32>
    %c0_12 = arith.constant 0 : index
    %c0_13 = arith.constant 0 : index
    %15 = vector.load %arg6[%c0_12, %c0_13] : memref<16x128xf32, #tpu.memory_space<vmem>>, vector<16x128xf32>
    %cst_14 = arith.constant dense<0.000000e+00> : vector<8x128xf32>
    %16 = tpu.matmul %14, %15, %cst_14 {dimension_numbers = #tpu.dot_dimension_numbers<[1], [0], [0], [1], [0, 0, 1, 1], [], []>} : vector<8x16xf32>, vector<16x128xf32>, vector<8x128xf32> -> vector<8x128xf32>
    %c0_15 = arith.constant 0 : index
    %c0_16 = arith.constant 0 : index
    %17 = vector.load %arg7[%c0_15, %c0_16] : memref<1x128xf32, #tpu.memory_space<vmem>>, vector<1x128xf32>
    %18 = vector.broadcast %17 : vector<1x128xf32> to vector<8x128xf32>
    %19 = arith.addf %16, %18 : vector<8x128xf32>
    %c0_17 = arith.constant 0 : index
    %c0_18 = arith.constant 0 : index
    %20 = vector.load %arg8[%c0_17, %c0_18] : memref<8x128xf32, #tpu.memory_space<vmem>>, vector<8x128xf32>
    tpu.vector_store %arg8[%c0_17, %c0_18], %19 {strides = array<i32>} : memref<8x128xf32, #tpu.memory_space<vmem>>, vector<8x128xf32>,
    return
  }
  func.func @transform_0(%arg0: i32) -> (i32, i32) {
    %c0_i32 = arith.constant 0 : i32
    %c0_i32_0 = arith.constant 0 : i32
    return %arg0, %c0_i32 : i32, i32
  }
  func.func @transform_1(%arg0: i32) -> (i32, i32) {
    %c0_i32 = arith.constant 0 : i32
    %c0_i32_0 = arith.constant 0 : i32
    %c0_i32_1 = arith.constant 0 : i32
    return %c0_i32, %c0_i32_0 : i32, i32
  }
  func.func @transform_2(%arg0: i32) -> (i32, i32) {
    %c0_i32 = arith.constant 0 : i32
    %c0_i32_0 = arith.constant 0 : i32
    %c0_i32_1 = arith.constant 0 : i32
    return %c0_i32, %c0_i32_0 : i32, i32
  }
  func.func @transform_3(%arg0: i32) -> (i32, i32) {
    %c0_i32 = arith.constant 0 : i32
    %c0_i32_0 = arith.constant 0 : i32
    %c0_i32_1 = arith.constant 0 : i32
    return %c0_i32, %c0_i32_0 : i32, i32
  }
  func.func @transform_4(%arg0: i32) -> (i32, i32) {
    %c0_i32 = arith.constant 0 : i32
    %c0_i32_0 = arith.constant 0 : i32
    %c0_i32_1 = arith.constant 0 : i32
    return %c0_i32, %c0_i32_0 : i32, i32
  }
  func.func @transform_5(%arg0: i32) -> (i32, i32) {
    %c0_i32 = arith.constant 0 : i32
    %c0_i32_0 = arith.constant 0 : i32
    %c0_i32_1 = arith.constant 0 : i32
    return %c0_i32, %c0_i32_0 : i32, i32
  }
  func.func @transform_6(%arg0: i32) -> (i32, i32) {
    %c0_i32 = arith.constant 0 : i32
    %c0_i32_0 = arith.constant 0 : i32
    %c0_i32_1 = arith.constant 0 : i32
    return %c0_i32, %c0_i32_0 : i32, i32
  }
  func.func @transform_7(%arg0: i32) -> (i32, i32) {
    %c0_i32 = arith.constant 0 : i32
    %c0_i32_0 = arith.constant 0 : i32
    return %arg0, %c0_i32 : i32, i32
  }
}

</mosaic_0001>

<bundles_post_ra>
// kernel: tpu_custom_call.1
= control target key start
LH: loop header
LB: loop body
LE: loop exit
PB: predicated region body
PF: predicated region fallthrough
CT: control target
= control target key end

     0   :  { %12 = vsyncpa [#allocation3], 0  ;;  %v980_v51 = vmov 1983009808   ;;  %v155_v53 = vlaneseq  ;;  %vm982_vm0 = vmmov 0   ;;  %vm225_vm1 = vcmask 130048   ;;  %s1400_s0 = inlined_call_operand.vmem [shape: f32[2,784], index: 0, kind: input, shape index: {}]   ;;  %s1401_s1 = inlined_call_operand.vmem [shape: f32[784,16], index: 1, kind: input, shape index: {}]   ;;  %s1402_s2 = inlined_call_operand.vmem [shape: f32[1,16], index: 2, kind: input, shape index: {}]   ;;  %s1403_s3 = inlined_call_operand.vmem [shape: f32[16,16], index: 3, kind: input, shape index: {}]   ;;  %s1404_s4 = inlined_call_operand.vmem [shape: f32[1,16], index: 4, kind: input, shape index: {}]   ;;  %s1405_s5 = inlined_call_operand.vmem [shape: f32[16,128], index: 5, kind: input, shape index: {}]   ;;  %s1406_s6 = inlined_call_operand.vmem [shape: f32[1,128], index: 6, kind: input, shape index: {}]   ;;  %s1407_s7 = inlined_call_operand.hbm [shape: f32[2,128], index: 7, kind: output, shape index: {}]  }
   0x1   :  { %v51_v0 = vld [vmem:[%s1401_s1 + $0x80] sm:$0xff]  ;;  %v52_v1 = vld [vmem:[%s1401_s1 + $0x88] sm:$0xff]  ;;  %v53_v12 = vld [vmem:[%s1401_s1 + $0x90] sm:$0xff]  ;;  %v153_v52 = vunpack.c.l.s4 %v980_v51 }
   0x2   :  { %v832_v2 = vpack.c.bf16 %v52_v1, %v51_v0  ;;  %v35_v3 = vld [vmem:[%s1401_s1] sm:$0xff]  ;;  %v36_v4 = vld [vmem:[%s1401_s1 + $0x8] sm:$0xff]  ;;  %v54_v13 = vld [vmem:[%s1401_s1 + $0x98] sm:$0xff] }
   0x3   :  { %v83_v5 = vld [vmem:[%s1401_s1 + $0x180] sm:$0xff]  ;;  %v834_v6 = vpack.c.bf16 %v36_v4, %v35_v3  ;;  %v84_v7 = vld [vmem:[%s1401_s1 + $0x188] sm:$0xff]  ;;  %v37_v14 = vld [vmem:[%s1401_s1 + $0x10] sm:$0xff]  ;;  %v836_v15 = vpack.c.bf16 %v54_v13, %v53_v12  ;;  %v156_v3 = vshrl.u32 %v155_v53, 7 }
   0x4   :  { %v67_v8 = vld [vmem:[%s1401_s1 + $0x100] sm:$0xff]  ;;  %v68_v9 = vld [vmem:[%s1401_s1 + $0x108] sm:$0xff]  ;;  %833 = vmatprep.subr.bf16.mxu0 %v832_v2  ;;  %v864_v10 = vpack.c.bf16 %v84_v7, %v83_v5  ;;  %v38_v16 = vld [vmem:[%s1401_s1 + $0x18] sm:$0xff]  ;;  %v154_v2 = vunpack.c.0.s8 %v153_v52 }
   0x5   :  { %v866_v11 = vpack.c.bf16 %v68_v9, %v67_v8  ;;  %835 = vmatpush3.bf16.msra.mxu0 %v834_v6  ;;  %v85_v17 = vld [vmem:[%s1401_s1 + $0x190] sm:$0xff]  ;;  %v86_v18 = vld [vmem:[%s1401_s1 + $0x198] sm:$0xff]  ;;  %v838_v19 = vpack.c.bf16 %v38_v16, %v37_v14  ;;  %v55_v23 = vld [vmem:[%s1401_s1 + $0xa0] sm:$0xff] }
   0x6   :  { %865 = vmatprep.subr.bf16.mxu1 %v864_v10  ;;  %v868_v20 = vpack.c.bf16 %v86_v18, %v85_v17  ;;  %v69_v21 = vld [vmem:[%s1401_s1 + $0x110] sm:$0xff]  ;;  %v70_v22 = vld [vmem:[%s1401_s1 + $0x118] sm:$0xff]  ;;  %837 = vmatprep.subr.bf16.mxu0 %v836_v15  ;;  %v56_v25 = vld [vmem:[%s1401_s1 + $0xa8] sm:$0xff] }
   0x7   :  { %867 = vmatpush3.bf16.msra.mxu1 %v866_v11  ;;  %v870_v24 = vpack.c.bf16 %v70_v22, %v69_v21  ;;  %v39_v26 = vld [vmem:[%s1401_s1 + $0x20] sm:$0xff]  ;;  %v40_v27 = vld [vmem:[%s1401_s1 + $0x28] sm:$0xff]  ;;  %v840_v28 = vpack.c.bf16 %v56_v25, %v55_v23  ;;  %v57_v35 = vld [vmem:[%s1401_s1 + $0xb0] sm:$0xff] }
   0x8   :  { %869 = vmatprep.subr.bf16.mxu1 %v868_v20  ;;  %v87_v29 = vld [vmem:[%s1401_s1 + $0x1a0] sm:$0xff]  ;;  %v88_v30 = vld [vmem:[%s1401_s1 + $0x1a8] sm:$0xff]  ;;  %v842_v32 = vpack.c.bf16 %v40_v27, %v39_v26  ;;  %v58_v36 = vld [vmem:[%s1401_s1 + $0xb8] sm:$0xff]  ;;  %v1195_v20 = vsub.s32 %v154_v2, %v156_v3 }
   0x9   :  { %v71_v31 = vld [vmem:[%s1401_s1 + $0x120] sm:$0xff]  ;;  %839 = vmatpush3.bf16.msra.mxu0 %v838_v19  ;;  %v872_v33 = vpack.c.bf16 %v88_v30, %v87_v29  ;;  %v72_v34 = vld [vmem:[%s1401_s1 + $0x128] sm:$0xff]  ;;  %v844_v37 = vpack.c.bf16 %v58_v36, %v57_v35  ;;  %v41_v38 = vld [vmem:[%s1401_s1 + $0x30] sm:$0xff] }
   0xa   :  { %841 = vmatprep.subr.bf16.mxu0 %v840_v28  ;;  %v42_v39 = vld [vmem:[%s1401_s1 + $0x38] sm:$0xff]  ;;  %v89_v40 = vld [vmem:[%s1401_s1 + $0x1b0] sm:$0xff]  ;;  %v874_v41 = vpack.c.bf16 %v72_v34, %v71_v31  ;;  %v59_v46 = vld [vmem:[%s1401_s1 + $0xc0] sm:$0xff] }
   0xb   :  { %871 = vmatpush3.bf16.msra.mxu1 %v870_v24  ;;  %v90_v42 = vld [vmem:[%s1401_s1 + $0x1b8] sm:$0xff]  ;;  %v73_v43 = vld [vmem:[%s1401_s1 + $0x130] sm:$0xff]  ;;  %v60_v47 = vld [vmem:[%s1401_s1 + $0xc8] sm:$0xff]  ;;  %v846_v48 = vpack.c.bf16 %v42_v39, %v41_v38 }
   0xc   :  { %873 = vmatprep.subr.bf16.mxu1 %v872_v33  ;;  %v876_v44 = vpack.c.bf16 %v90_v42, %v89_v40  ;;  %v74_v45 = vld [vmem:[%s1401_s1 + $0x138] sm:$0xff]  ;;  %v91_v49 = vld [vmem:[%s1401_s1 + $0x1c0] sm:$0xff]  ;;  %v92_v50 = vld [vmem:[%s1401_s1 + $0x1c8] sm:$0xff]  ;;  %v848_v54 = vpack.c.bf16 %v60_v47, %v59_v46 }
   0xd   :  { %843 = vmatpush3.bf16.msra.mxu0 %v842_v32  ;;  %v43_v55 = vld [vmem:[%s1401_s1 + $0x40] sm:$0xff]  ;;  %v44_v56 = vld [vmem:[%s1401_s1 + $0x48] sm:$0xff]  ;;  %v878_v57 = vpack.c.bf16 %v74_v45, %v73_v43  ;;  %v61_v58 = vld [vmem:[%s1401_s1 + $0xd0] sm:$0xff]  ;;  %v880_v60 = vpack.c.bf16 %v92_v50, %v91_v49 }
   0xe   :  { %845 = vmatprep.subr.bf16.mxu0 %v844_v37  ;;  %v62_v59 = vld [vmem:[%s1401_s1 + $0xd8] sm:$0xff]  ;;  %v75_v61 = vld [vmem:[%s1401_s1 + $0x140] sm:$0xff]  ;;  %v76_v62 = vld [vmem:[%s1401_s1 + $0x148] sm:$0xff]  ;;  %v850_v63 = vpack.c.bf16 %v44_v56, %v43_v55 }
   0xf   :  { %875 = vmatpush3.bf16.msra.mxu1 %v874_v41  ;;  %v93_v0 = vld [vmem:[%s1401_s1 + $0x1d0] sm:$0xff]  ;;  %v94_v1 = vld [vmem:[%s1401_s1 + $0x1d8] sm:$0xff]  ;;  %v852_v4 = vpack.c.bf16 %v62_v59, %v61_v58  ;;  %v882_v8 = vpack.c.bf16 %v76_v62, %v75_v61  ;;  %v63_v10 = vld [vmem:[%s1401_s1 + $0xe0] sm:$0xff] }
  0x10   :  { %877 = vmatprep.subr.bf16.mxu1 %v876_v44  ;;  %v45_v5 = vld [vmem:[%s1401_s1 + $0x50] sm:$0xff]  ;;  %v46_v6 = vld [vmem:[%s1401_s1 + $0x58] sm:$0xff]  ;;  %v64_v11 = vld [vmem:[%s1401_s1 + $0xe8] sm:$0xff]  ;;  %v884_v12 = vpack.c.bf16 %v94_v1, %v93_v0  ;;  %v981_v1 = vmov 0.0|0.0  }
  0x11   :  { %847 = vmatpush3.bf16.msra.mxu0 %v846_v48  ;;  %v77_v7 = vld [vmem:[%s1401_s1 + $0x150] sm:$0xff]  ;;  %v78_v9 = vld [vmem:[%s1401_s1 + $0x158] sm:$0xff]  ;;  %v47_v13 = vld [vmem:[%s1401_s1 + $0x60] sm:$0xff]  ;;  %v854_v16 = vpack.c.bf16 %v46_v6, %v45_v5  ;;  %v856_v21 = vpack.c.bf16 %v64_v11, %v63_v10 }
  0x12   :  { %849 = vmatprep.subr.bf16.mxu0 %v848_v54  ;;  %v48_v14 = vld [vmem:[%s1401_s1 + $0x68] sm:$0xff]  ;;  %v95_v15 = vld [vmem:[%s1401_s1 + $0x1e0] sm:$0xff]  ;;  %v65_v18 = vld [vmem:[%s1401_s1 + $0xf0] sm:$0xff]  ;;  %v886_v22 = vpack.c.bf16 %v78_v9, %v77_v7 }
  0x13   :  { %879 = vmatpush3.bf16.msra.mxu1 %v878_v57  ;;  %v96_v17 = vld [vmem:[%s1401_s1 + $0x1e8] sm:$0xff]  ;;  %v66_v19 = vld [vmem:[%s1401_s1 + $0xf8] sm:$0xff]  ;;  %v79_v26 = vld [vmem:[%s1401_s1 + $0x160] sm:$0xff]  ;;  %v858_v29 = vpack.c.bf16 %v48_v14, %v47_v13  ;;  %v983_v14 = vmov 0.0  }
  0x14   :  { %881 = vmatprep.subr.bf16.mxu1 %v880_v60  ;;  %v944_v23 = vld [vmem:[%s1400_s0] ss:$14 sps:$4 sm:$0xff]   ;;  %v946_v24 = vld [vmem:[%s1400_s0 + $0x1c] ss:$14 sps:$4 sm:$0xff]   ;;  %v888_v25 = vpack.c.bf16 %v96_v17, %v95_v15  ;;  %v948_v33 = vld [vmem:[%s1400_s0 + $0x4] ss:$14 sps:$4 sm:$0xff]   ;;  %v860_v35 = vpack.c.bf16 %v66_v19, %v65_v18 }
  0x15   :  { %851 = vmatpush3.bf16.msra.mxu0 %v850_v63  ;;  %v80_v27 = vld [vmem:[%s1401_s1 + $0x168] sm:$0xff]  ;;  %v97_v28 = vld [vmem:[%s1401_s1 + $0x1f0] sm:$0xff]  ;;  %v98_v30 = vld [vmem:[%s1401_s1 + $0x1f8] sm:$0xff]  ;;  %v158_v31 = vrot.slane %v944_v23, %v1195_v20  ;;  %v172_v32 = vrot.slane %v946_v24, %v1195_v20  ;;  %v165_v42 = vrot.slane %v948_v33, %v1195_v20 }
  0x16   :  { %853 = vmatprep.subr.bf16.mxu0 %v852_v4  ;;  %v949_v34 = vld [vmem:[%s1400_s0 + $0x20] ss:$14 sps:$4 sm:$0xff]   ;;  %v50_v37 = vld [vmem:[%s1401_s1 + $0x78] sm:$0xff]  ;;  %v890_v38 = vpack.c.bf16 %v80_v27, %v79_v26  ;;  %v892_v44 = vpack.c.bf16 %v98_v30, %v97_v28  ;;  %v953_v5 = vld [vmem:[%s1400_s0 + $0x24] ss:$14 sps:$4 sm:$0xff]  }
  0x17   :  { %883 = vmatpush3.bf16.msra.mxu1 %v882_v8  ;;  %v49_v36 = vld [vmem:[%s1401_s1 + $0x70] sm:$0xff]  ;;  %v181_v39 = vcombine.high %v158_v31, %v172_v32  ;;  %v115_v40 = vld [vmem:[%s1401_s1 + $0x280] sm:$0xff]  ;;  %v116_v41 = vld [vmem:[%s1401_s1 + $0x288] sm:$0xff]  ;;  %v179_v43 = vrot.slane %v949_v34, %v1195_v20  ;;  %v180_v55 = vcombine.low %v158_v31, %v172_v32  ;;  %v208_v11 = vrot.slane %v953_v5, %v1195_v20 }
  0x18   :  { %885 = vmatprep.subr.bf16.mxu1 %v884_v12  ;;  %v81_v45 = vld [vmem:[%s1401_s1 + $0x170] sm:$0xff]  ;;  %v82_v46 = vld [vmem:[%s1401_s1 + $0x178] sm:$0xff]  ;;  %v862_v47 = vpack.c.bf16 %v50_v37, %v49_v36  ;;  %v896_v49 = vpack.c.bf16 %v116_v41, %v115_v40  ;;  %v99_v50 = vld [vmem:[%s1401_s1 + $0x200] sm:$0xff] }
  0x19   :  { %855 = vmatpush3.bf16.msra.mxu0 %v854_v16  ;;  %292 = vmatprep.mubr.f32.mxu0 %v181_v39  ;;  %v183_v48 = vcombine.high %v165_v42, %v179_v43  ;;  %v100_v51 = vld [vmem:[%s1401_s1 + $0x208] sm:$0xff]  ;;  %v894_v52 = vpack.c.bf16 %v82_v46, %v81_v45  ;;  %v117_v53 = vld [vmem:[%s1401_s1 + $0x290] sm:$0xff]  ;;  %v118_v54 = vld [vmem:[%s1401_s1 + $0x298] sm:$0xff]  ;;  %v182_v57 = vcombine.low %v165_v42, %v179_v43 }
  0x1a   :  { %857 = vmatprep.subr.bf16.mxu0 %v856_v21  ;;  %v898_v56 = vpack.c.bf16 %v100_v51, %v99_v50  ;;  %v900_v58 = vpack.c.bf16 %v118_v54, %v117_v53  ;;  %v101_v59 = vld [vmem:[%s1401_s1 + $0x210] sm:$0xff]  ;;  %v102_v60 = vld [vmem:[%s1401_s1 + $0x218] sm:$0xff]  ;;  %v119_v61 = vld [vmem:[%s1401_s1 + $0x2a0] sm:$0xff] }
  0x1b   :  { %887 = vmatpush3.bf16.msra.mxu1 %v886_v22  ;;  %362 = vmatprep.mubr.f32.mxu1 %v183_v48  ;;  %v120_v62 = vld [vmem:[%s1401_s1 + $0x2a8] sm:$0xff]  ;;  %v103_v63 = vld [vmem:[%s1401_s1 + $0x220] sm:$0xff]  ;;  %v902_v2 = vpack.c.bf16 %v102_v60, %v101_v59  ;;  %v121_v3 = vld [vmem:[%s1401_s1 + $0x2b0] sm:$0xff] }
  0x1c   :  { %889 = vmatprep.subr.bf16.mxu1 %v888_v25  ;;  %v104_v0 = vld [vmem:[%s1401_s1 + $0x228] sm:$0xff]  ;;  %v904_v6 = vpack.c.bf16 %v120_v62, %v119_v61  ;;  %v122_v9 = vld [vmem:[%s1401_s1 + $0x2b8] sm:$0xff]  ;;  %v131_v12 = vld [vmem:[%s1401_s1 + $0x300] sm:$0xff] }
  0x1d   :  { %859 = vmatpush3.bf16.msra.mxu0 %v858_v29  ;;  %v950_v4 = vld [vmem:[%s1400_s0 + $0x8] ss:$14 sps:$4 sm:$0xff]   ;;  %v952_v7 = vld [vmem:[%s1400_s0 + $0xc] ss:$14 sps:$4 sm:$0x33]   ;;  %v906_v18 = vpack.c.bf16 %v104_v0, %v103_v63  ;;  %v908_v21 = vpack.c.bf16 %v122_v9, %v121_v3  ;;  %v107_v28 = vld [vmem:[%s1401_s1 + $0x240] sm:$0xff] }
  0x1e   :  { %861 = vmatprep.subr.bf16.mxu0 %v860_v35  ;;  %v955_v8 = vld [vmem:[%s1400_s0 + $0x28] ss:$14 sps:$4 sm:$0x33]   ;;  %v194_v10 = vrot.slane %v950_v4, %v1195_v20  ;;  %v201_v15 = vrot.slane %v952_v7, %v1195_v20  ;;  %v106_v23 = vld [vmem:[%s1401_s1 + $0x238] sm:$0xff]  ;;  %v127_v36 = vld [vmem:[%s1401_s1 + $0x2e0] sm:$0xff] }
  0x1f   :  { %891 = vmatpush3.bf16.msra.mxu1 %v890_v38  ;;  %v132_v13 = vld [vmem:[%s1401_s1 + $0x308] sm:$0xff]  ;;  %v215_v16 = vrot.slane %v955_v8, %v1195_v20  ;;  %v105_v22 = vld [vmem:[%s1401_s1 + $0x230] sm:$0xff]  ;;  %v123_v20 = vld [vmem:[%s1401_s1 + $0x2c0] sm:$0xff] }
  0x20   :  { %893 = vmatprep.subr.bf16.mxu1 %v892_v44  ;;  %v929_v17 = vpack.c.bf16 %v132_v13, %v131_v12  ;;  %v217_v19 = vcombine.high %v194_v10, %v208_v11  ;;  %v124_v25 = vld [vmem:[%s1401_s1 + $0x2c8] sm:$0xff]  ;;  %v910_v26 = vpack.c.bf16 %v106_v23, %v105_v22  ;;  %v125_v30 = vld [vmem:[%s1401_s1 + $0x2d0] sm:$0xff]  ;;  %v126_v31 = vld [vmem:[%s1401_s1 + $0x2d8] sm:$0xff] }
  0x21   :  { %863 = vmatpush3.bf16.msra.mxu0 %v862_v47  ;;  %v218_v24 = vcombine.low %v201_v15, %v215_v16  ;;  %v912_v27 = vpack.c.bf16 %v124_v25, %v123_v20  ;;  %v108_v29 = vld [vmem:[%s1401_s1 + $0x248] sm:$0xff]  ;;  %v916_v33 = vpack.c.bf16 %v126_v31, %v125_v30  ;;  %v109_v34 = vld [vmem:[%s1401_s1 + $0x250] sm:$0xff]  ;;  %v110_v35 = vld [vmem:[%s1401_s1 + $0x258] sm:$0xff] }
  0x22   :  { %897 = vmatprep.subr.bf16.mxu0 %v896_v49  ;;  %v914_v32 = vpack.c.bf16 %v108_v29, %v107_v28  ;;  %v128_v37 = vld [vmem:[%s1401_s1 + $0x2e8] sm:$0xff]  ;;  %v918_v38 = vpack.c.bf16 %v110_v35, %v109_v34  ;;  %v111_v40 = vld [vmem:[%s1401_s1 + $0x260] sm:$0xff]  ;;  %v129_v42 = vld [vmem:[%s1401_s1 + $0x2f0] sm:$0xff]  ;;  %v216_v49 = vcombine.low %v194_v10, %v208_v11 }
  0x23   :  { %895 = vmatpush3.bf16.msra.mxu1 %v894_v52  ;;  %v920_v39 = vpack.c.bf16 %v128_v37, %v127_v36  ;;  %v112_v41 = vld [vmem:[%s1401_s1 + $0x268] sm:$0xff]  ;;  %v130_v43 = vld [vmem:[%s1401_s1 + $0x2f8] sm:$0xff]  ;;  %v113_v46 = vld [vmem:[%s1401_s1 + $0x270] sm:$0xff] }
  0x24   :  { %293 = vmatmul.mubr.f32.vlgmr.msra.gmra.mrb[0].mxu0 %v180_v55  ;;  %928 = vmatprep.subr.bf16.mxu1 %v981_v1  ;;  %v922_v44 = vpack.c.bf16 %v112_v41, %v111_v40  ;;  %v924_v45 = vpack.c.bf16 %v130_v43, %v129_v42  ;;  %v114_v47 = vld [vmem:[%s1401_s1 + $0x278] sm:$0xff]  ;;  %v509_v50 = vld [vmem:[%s1403_s3] sm:$0xff]  ;;  %v510_v51 = vld [vmem:[%s1403_s3 + $0x8] sm:$0xff] }
  0x25   :  { %899 = vmatpush3.bf16.msra.mxu0 %v898_v56  ;;  %432 = vmatprep.mubr.f32.mxu0 %v217_v19  ;;  %v926_v48 = vpack.c.bf16 %v114_v47, %v113_v46  ;;  %v932_v52 = vpack.c.bf16 %v510_v51, %v509_v50  ;;  %v691_v54 = vld [vmem:[%s1402_s2] ss:$0 sm:$0xff]  ;;  %v593_v7 = vld [vmem:[%s1405_s5 + $0x8] sm:$0xff] }
  0x26   :  { %363 = vmatmul.mubr.f32.vlgmr.msra.gmra.mrb[0].mxu1 %v182_v57  ;;  %901 = vmatprep.subr.bf16.mxu0 %v900_v58  ;;  %v693_v9 = vld [vmem:[%s1404_s4] ss:$0 sm:$0xff] }
  0x27   :  { %815 = vmatprep.mubr.msk.f32.mxu1 %vm982_vm0, %v983_v14  ;;  %930 = vmatpush3.bf16.msra.mxu1 %v929_v17 }
  0x28   :  { %931 = vmatprep.subr.bf16.mxu1 %v981_v1 }
  0x29   :  { %903 = vmatpush3.bf16.msra.mxu0 %v902_v2 }
  0x2a   :  { %905 = vmatprep.subr.bf16.mxu0 %v904_v6  ;;  %816 = vmatmul.mubr.msk.f32.vlgmr.msra.gmra.mrb[2].mxu1 %vm225_vm1, %v218_v24  ;;  %v592_v6 = vld [vmem:[%s1405_s5] sm:$0xff] }
  0x2b   :  { %822 = vmatprep.mubr.msk.f32.mxu1 %vm982_vm0, %v983_v14  ;;  %933 = vmatpush3.bf16.msra.mxu1 %v932_v52  ;;  %v935_v8 = vpack.c.bf16 %v593_v7, %v592_v6 }
  0x2c   :  { %934 = vmatprep.subr.bf16.mxu1 %v981_v1 }
  0x2d   :  { %907 = vmatpush3.bf16.msra.mxu0 %v906_v18 }
  0x2e   :  { %909 = vmatprep.subr.bf16.mxu0 %v908_v21 }
  0x31   :  { %911 = vmatpush3.bf16.msra.mxu0 %v910_v26 }
  0x32   :  { %913 = vmatprep.subr.bf16.mxu0 %v912_v27 }
  0x35   :  { %915 = vmatpush3.bf16.msra.mxu0 %v914_v32 }
  0x36   :  { %917 = vmatprep.subr.bf16.mxu0 %v916_v33 }
  0x39   :  { %919 = vmatpush3.bf16.msra.mxu0 %v918_v38 }
  0x3a   :  { %921 = vmatprep.subr.bf16.mxu0 %v920_v39 }
  0x3d   :  { %923 = vmatpush3.bf16.msra.mxu0 %v922_v44 }
  0x3e   :  { %925 = vmatprep.subr.bf16.mxu0 %v924_v45 }
  0x41   :  { %927 = vmatpush3.bf16.msra.mxu0 %v926_v48 }
  0x44   :  { %433 = vmatmul.mubr.f32.vlgmr.msra.gmra.mrb[2].mxu0 %v216_v49 }
  0xf7   :  { %v729_v53 = vpop.f32.mrb[0].mxu0 }
  0xf8   :  { %v730_v55 = vpop.f32.mrb[1].mxu0 }
  0xf9   :  { %v731_v56 = vadd.f32 %v730_v55, %v729_v53  ;;  %v764_v57 = vpop.f32.mrb[0].mxu1 }
  0xfa   :  { %v765_v58 = vpop.f32.mrb[1].mxu1 }
  0xfb   :  { %v295_v59 = vadd.f32 %v731_v56, %v691_v54  ;;  %v766_v60 = vadd.f32 %v765_v58, %v764_v57 }
  0xfd   :  { %v365_v61 = vadd.f32 %v766_v60, %v295_v59  ;;  %v504_v62 = vpop.f32.mrb[2].mxu1 }
  0xfe   :  { %v817_v63 = vpop.f32.mrb[3].mxu1 }
 0x117   :  { %v799_v0 = vpop.f32.mrb[2].mxu0 }
 0x118   :  { %v800_v2 = vpop.f32.mrb[3].mxu0 }
 0x119   :  { %v801_v3 = vadd.f32 %v800_v2, %v799_v0 }
 0x11b   :  { %v435_v4 = vadd.f32 %v801_v3, %v365_v61 }
 0x11d   :  { %v505_v5 = vadd.f32 %v504_v62, %v435_v4 }
 0x11f   :  { %v508_v1 = vmax.f32 %v505_v5, 0.0 }
 0x121   :  { %823 = vmatmul.mubr.msk.f32.vlgmr.msra.gmra.mrb[4].mxu1 %vm225_vm1, %v508_v1 }
 0x122   :  { %829 = vmatprep.mubr.msk.f32.mxu1 %vm982_vm0, %v983_v14  ;;  %936 = vmatpush3.bf16.msra.mxu1 %v935_v8  ;;  %v695_v14 = vld [vmem:[%s1406_s6] ss:$0 sm:$0xff] }
 0x1f4   :  { %v587_v10 = vpop.f32.mrb[4].mxu1 }
 0x1f5   :  { %v588_v11 = vadd.f32 %v693_v9, %v587_v10  ;;  %v824_v12 = vpop.f32.mrb[5].mxu1 }
 0x1f7   :  { %v591_v13 = vmax.f32 %v588_v11, 0.0 }
 0x1f9   :  { %830 = vmatmul.mubr.msk.f32.vlgmr.msra.gmra.mrb[6].mxu1 %vm225_vm1, %v591_v13 }
 0x2cc   :  { %v670_v15 = vpop.f32.mrb[6].mxu1 }
 0x2cd   :  { %v671_v16 = vadd.f32 %v695_v14, %v670_v15  ;;  %v831_v17 = vpop.f32.mrb[7].mxu1 }
 0x2cf   :  { %674 = vst [vmem:[#allocation2] sm:$0xff] %v671_v16 }
 0x2d0   :  { %679 = vsyncadd [#allocation3], 96  ;;  %s984_s5 = smov [#allocation2]  }
 0x2d1   :  { %s680_s15 = sshll.u32 %s984_s5, 4  ;;  %s681_s15 = int_to_ptr.vmem [resolvable:$true] %s680_s15 }
 0x2d2   :  { %s956_s0 = scalar_lea.vmem %s681_s15, 32  ;;  %s960_s4 = scalar_lea.vmem %s681_s15, 128 }
 0x2d3   :  { %p957_p0 = scmp.ne.s32.totalorder %s681_s15, %s956_s0  ;;  %p961_p1 = scmp.lt.s32.totalorder %s681_s15, %s681_s15 }
 0x2d4   :  { %p962_p2 = scmp.lt.s32.totalorder %s960_s4, %s956_s0 }
 0x2d6   :  { %p963_p3 = por %p962_p2, %p961_p1 }
 0x2d8   :  { %p964_p4 = pnand %p963_p3, %p957_p0 }
 0x2da   :  { %967 = shalt.err (!%p964_p4)
}
 0x2db   :  { %s968_s6 = scalar_lea.hbm %s1407_s7, 32 }
 0x2dc   :  { %p969_p5 = scmp.ne.s32.totalorder %s1407_s7, %s968_s6  ;;  %p972_p6 = scmp.lt.u32.totalorder %s968_s6, %s1407_s7 }
 0x2de   :  { %p974_p7 = pnand %p972_p6, %p969_p5 }
 0x2e0   :  { %977 = shalt.err (!%p974_p7)
}
 0x2e1   :  { %s985_s22 = smov 32   ;;  %s986_s23 = smov 2  }
 0x2e2   :  { %686 = dma.vmem_to_hbm [thread:$0]  %s681_s15, 32, %s1407_s7, [#allocation3], %s985_s22, %s985_s22, %s986_s23  }
 0x2e3   :  { %978 = dma.done.wait [#allocation3], 128  }
 0x2e4   :  { %979 = vsyncadd [#allocation3], 4294967168 }
 0x2e5   :  { %690 = vsyncpa [#allocation3], 1 }

</bundles_post_ra>
